<compile_context>
chip_gen: v6e
topology: v6e:2x2x1
jax: 0.10.0
libtpu: 0.0.40
codegen_flags: <defaults>
</compile_context>

<pallas_src>
from functools import partial

import jax
import jax.numpy as jnp
from jax.experimental import pallas as pl
from jax.experimental.pallas import tpu as pltpu

_LANE = 128
_SUBLANE = 8
_H1 = 64      # fc1 hidden width (kept at 64, NOT padded to 128)
_H2 = 256     # fc2 hidden width (lane-aligned already)


def _ceil_to(a, m):
    return (a + m - 1) // m * m


def _bucket_batch(B):
    """Bucketed (Bp, grid, tb) so distinct runtime batch sizes reuse compiles.

    Bp: power of two up to 512, then multiples of 256 (bounded padding).
    grid: 1 for small/online batches, 2 for replay-size batches (shards the
          'parallel' batch axis across both TensorCores on v7x).
    """
    b8 = _ceil_to(max(B, 1), _SUBLANE)
    if b8 <= 512:
        Bp = max(_SUBLANE, pl.next_power_of_2(b8))
    else:
        Bp = _ceil_to(b8, 256)
    grid = 2 if Bp >= 128 else 1
    tb = Bp // grid          # Bp is a multiple of 16 whenever grid == 2
    return Bp, grid, tb


def _dqn_kernel(x_ref, w1_ref, b1_ref, w2_ref, b2_ref, w3_ref, b3_ref, out_ref):
    n_in = x_ref.shape[-1]        # static (2 for MountainCar)
    n_act = out_ref.shape[-1]     # static (3 for MountainCar)

    # fc1 as a VPU FMA: h1 = b1 + sum_k x[:, k] * w1[k, :]  (outer products).
    # Avoids an MXU matmul with a tiny, mostly-padded contraction dim.
    x = x_ref[...]                # (tb, n_in) f32
    w1 = w1_ref[...]              # (n_in, 64) f32
    h1 = b1_ref[...]              # (1, 64) f32 -> broadcasts to (tb, 64)
    for k in range(n_in):         # static unrolled loop (n_in is tiny)
        h1 = h1 + x[:, k:k + 1] * w1[k:k + 1, :]
    h1 = jnp.maximum(h1, 0.0)

    # fc2: bf16 MXU matmul (K=64), f32 accumulate; bias/ReLU epilogue in f32.
    h2 = jnp.dot(h1.astype(jnp.bfloat16), w2_ref[...],
                 preferred_element_type=jnp.float32)
    h2 = jnp.maximum(h2 + b2_ref[...], 0.0)

    # fc3: bf16 MXU matmul, f32 accumulate; bias add in f32, no activation.
    q = jnp.dot(h2.astype(jnp.bfloat16), w3_ref[...],
                preferred_element_type=jnp.float32)
    q = q + b3_ref[...]

    # Store only the real action columns (masked vst) -> tiny HBM writeback.
    out_ref[...] = q[:, :n_act]


def init_params(key, n_inputs, n_actions):
    """Deterministic init mimicking PyTorch Linear default (U(+-1/sqrt(fan_in))).
    Weights stored as (in, out) so the kernel computes y = x @ W + b directly."""
    ks = jax.random.split(key, 6)

    def lin(kw, kb, fan_in, fan_out):
        bound = 1.0 / jnp.sqrt(fan_in)
        w = jax.random.uniform(kw, (fan_in, fan_out), jnp.float32, -bound, bound)
        b = jax.random.uniform(kb, (fan_out,), jnp.float32, -bound, bound)
        return w, b

    w1, b1 = lin(ks[0], ks[1], n_inputs, _H1)
    w2, b2 = lin(ks[2], ks[3], _H1, _H2)
    w3, b3 = lin(ks[4], ks[5], _H2, n_actions)
    return {"w1": w1, "b1": b1, "w2": w2, "b2": b2, "w3": w3, "b3": b3}


def prepare_params(params, n_inputs, n_actions):
    """One-time layout/dtype prep (hoisted out of the per-call path)."""
    n_act_p = _ceil_to(max(n_actions, 1), _LANE)   # 3 -> 128 (lane-dense matmul)

    w1 = params["w1"].astype(jnp.float32)                          # (n_in, 64)
    b1 = params["b1"].reshape(1, _H1).astype(jnp.float32)          # (1, 64)
    w2 = params["w2"].astype(jnp.bfloat16)                         # (64, 256)
    b2 = params["b2"].reshape(1, _H2).astype(jnp.float32)          # (1, 256)
    w3 = (jnp.zeros((_H2, n_act_p), jnp.bfloat16)
          .at[:, :n_actions].set(params["w3"].astype(jnp.bfloat16)))
    b3 = (jnp.zeros((1, n_act_p), jnp.float32)
          .at[:, :n_actions].set(params["b3"].reshape(1, n_actions)))

    return {"w1": w1, "b1": b1, "w2": w2, "b2": b2, "w3": w3, "b3": b3,
            "n_inputs": n_inputs, "n_actions": n_actions, "n_act_p": n_act_p}


def dqn_forward(state, prepared):
    """state: (B, n_inputs). Returns (B, n_actions) f32 Q-values."""
    B, n_in = state.shape
    assert n_in == prepared["n_inputs"]
    n_act = prepared["n_actions"]
    n_act_p = prepared["n_act_p"]

    Bp, grid, tb = _bucket_batch(B)

    x = state.astype(jnp.float32)
    if Bp != B:
        # Pad only the (tiny) batch dim; feature dim stays at its true width.
        x = jnp.pad(x, ((0, Bp - B), (0, 0)))

    const = lambda i: (0, 0)   # weights/biases stay VMEM-resident across grid
    out = pl.pallas_call(
        _dqn_kernel,
        out_shape=jax.ShapeDtypeStruct((Bp, n_act), jnp.float32),
        grid=(grid,),
        in_specs=[
            pl.BlockSpec((tb, n_in), lambda i: (i, 0)),   # x (pipelined)
            pl.BlockSpec((n_in, _H1), const),             # w1 (f32)
            pl.BlockSpec((1, _H1), const),                # b1
            pl.BlockSpec((_H1, _H2), const),              # w2 (bf16)
            pl.BlockSpec((1, _H2), const),                # b2
            pl.BlockSpec((_H2, n_act_p), const),          # w3 (bf16)
            pl.BlockSpec((1, n_act_p), const),            # b3
        ],
        out_specs=pl.BlockSpec((tb, n_act), lambda i: (i, 0)),
        compiler_params=pltpu.CompilerParams(
            dimension_semantics=("parallel",),
            vmem_limit_bytes=32 * 1024 * 1024),
    )(x, prepared["w1"], prepared["b1"], prepared["w2"], prepared["b2"],
      prepared["w3"], prepared["b3"])

    return out[:B] if Bp != B else out


if __name__ == "__main__":
    # MountainCar: observation dim = 2, actions = 3.
    # TODO(synk): Adam optimizer / MSELoss / training step from the PyTorch
    # module are not part of the forward pass and are not implemented here.
    n_inputs, n_actions = 2, 3
    key = jax.random.PRNGKey(0)
    k_param, k_s1, k_s2 = jax.random.split(key, 3)

    raw = init_params(k_param, n_inputs, n_actions)
    prepared = prepare_params(raw, n_inputs, n_actions)

    # Small "online" batch -> grid=1 path.
    state_small = jax.random.normal(k_s1, (8, n_inputs), jnp.float32)
    out_small = jax.block_until_ready(dqn_forward(state_small, prepared))

    # Replay-minibatch-style batch -> bucketed Bp=768, grid=2 (megacore) path.
    state_big = jax.random.normal(k_s2, (600, n_inputs), jnp.float32)
    out_big = jax.block_until_ready(dqn_forward(state_big, prepared))

    # Pure-JAX f32 reference (kernel uses bf16 matmuls -> loose tolerance).
    def ref_fwd(s):
        h1 = jnp.maximum(s @ raw["w1"] + raw["b1"], 0.0)
        h2 = jnp.maximum(h1 @ raw["w2"] + raw["b2"], 0.0)
        return h2 @ raw["w3"] + raw["b3"]

    ref_small = ref_fwd(state_small)
    ref_big = ref_fwd(state_big)

    assert out_small.shape == (8, n_actions)
    assert out_big.shape == (600, n_actions)
    assert jnp.allclose(out_small, ref_small, atol=3e-2, rtol=3e-2), "small-batch mismatch"
    assert jnp.allclose(out_big, ref_big, atol=3e-2, rtol=3e-2), "big-batch mismatch"

    print("KERNEL_OK")
</pallas_src>

<mosaic_0001>
module attributes {stable_mosaic.version = 11 : i64} {
  func.func @_dqn_kernel(%arg0: i32, %arg1: memref<8x2xf32, #tpu.memory_space<vmem>>, %arg2: memref<2x64xf32, #tpu.memory_space<vmem>>, %arg3: memref<1x64xf32, #tpu.memory_space<vmem>>, %arg4: memref<64x256xbf16, #tpu.memory_space<vmem>>, %arg5: memref<1x256xf32, #tpu.memory_space<vmem>>, %arg6: memref<256x128xbf16, #tpu.memory_space<vmem>>, %arg7: memref<1x128xf32, #tpu.memory_space<vmem>>, %arg8: memref<8x3xf32, #tpu.memory_space<vmem>>) attributes {dimension_semantics = [#tpu.dimension_semantics<parallel>], iteration_bounds = array<i64: 1>, scalar_prefetch = 0 : i64, scratch_operands = 0 : i64, tpu.core_type = #tpu.core_type<tc>, window_params = [{transform_indices = @transform_0, window_bounds = array<i64: 8, 2>}, {pipeline_mode = #tpu.pipeline_mode<synchronous>, transform_indices = @transform_1, window_bounds = array<i64: 2, 64>}, {pipeline_mode = #tpu.pipeline_mode<synchronous>, transform_indices = @transform_2, window_bounds = array<i64: 1, 64>}, {pipeline_mode = #tpu.pipeline_mode<synchronous>, transform_indices = @transform_3, window_bounds = array<i64: 64, 256>}, {pipeline_mode = #tpu.pipeline_mode<synchronous>, transform_indices = @transform_4, window_bounds = array<i64: 1, 256>}, {pipeline_mode = #tpu.pipeline_mode<synchronous>, transform_indices = @transform_5, window_bounds = array<i64: 256, 128>}, {pipeline_mode = #tpu.pipeline_mode<synchronous>, transform_indices = @transform_6, window_bounds = array<i64: 1, 128>}, {transform_indices = @transform_7, window_bounds = array<i64: 8, 3>}]} {
    %c0 = arith.constant 0 : index
    %c0_0 = arith.constant 0 : index
    %0 = vector.load %arg1[%c0, %c0_0] : memref<8x2xf32, #tpu.memory_space<vmem>>, vector<8x2xf32>
    %c0_1 = arith.constant 0 : index
    %c0_2 = arith.constant 0 : index
    %1 = vector.load %arg2[%c0_1, %c0_2] : memref<2x64xf32, #tpu.memory_space<vmem>>, vector<2x64xf32>
    %c0_3 = arith.constant 0 : index
    %c0_4 = arith.constant 0 : index
    %2 = vector.load %arg3[%c0_3, %c0_4] : memref<1x64xf32, #tpu.memory_space<vmem>>, vector<1x64xf32>
    %3 = vector.extract_strided_slice %0 {offsets = [0, 0], sizes = [8, 1], strides = [1, 1]} : vector<8x2xf32> to vector<8x1xf32>
    %4 = vector.extract_strided_slice %1 {offsets = [0, 0], sizes = [1, 64], strides = [1, 1]} : vector<2x64xf32> to vector<1x64xf32>
    %5 = vector.broadcast %3 : vector<8x1xf32> to vector<8x64xf32>
    %6 = vector.broadcast %4 : vector<1x64xf32> to vector<8x64xf32>
    %7 = arith.mulf %5, %6 : vector<8x64xf32>
    %8 = vector.broadcast %2 : vector<1x64xf32> to vector<8x64xf32>
    %9 = arith.addf %8, %7 : vector<8x64xf32>
    %10 = vector.extract_strided_slice %0 {offsets = [0, 1], sizes = [8, 1], strides = [1, 1]} : vector<8x2xf32> to vector<8x1xf32>
    %11 = vector.extract_strided_slice %1 {offsets = [1, 0], sizes = [1, 64], strides = [1, 1]} : vector<2x64xf32> to vector<1x64xf32>
    %12 = vector.broadcast %10 : vector<8x1xf32> to vector<8x64xf32>
    %13 = vector.broadcast %11 : vector<1x64xf32> to vector<8x64xf32>
    %14 = arith.mulf %12, %13 : vector<8x64xf32>
    %15 = arith.addf %9, %14 : vector<8x64xf32>
    %cst = arith.constant 0.000000e+00 : f32
    %16 = vector.broadcast %cst : f32 to vector<8x64xf32>
    %17 = arith.maximumf %15, %16 : vector<8x64xf32>
    %18 = arith.truncf %17 : vector<8x64xf32> to vector<8x64xbf16>
    %c0_5 = arith.constant 0 : index
    %c0_6 = arith.constant 0 : index
    %19 = vector.load %arg4[%c0_5, %c0_6] : memref<64x256xbf16, #tpu.memory_space<vmem>>, vector<64x256xbf16>
    %cst_7 = arith.constant dense<0.000000e+00> : vector<8x256xf32>
    %20 = tpu.matmul %18, %19, %cst_7 {dimension_numbers = #tpu.dot_dimension_numbers<[1], [0], [0], [1], [0, 0, 1, 1], [], []>} : vector<8x64xbf16>, vector<64x256xbf16>, vector<8x256xf32> -> vector<8x256xf32>
    %c0_8 = arith.constant 0 : index
    %c0_9 = arith.constant 0 : index
    %21 = vector.load %arg5[%c0_8, %c0_9] : memref<1x256xf32, #tpu.memory_space<vmem>>, vector<1x256xf32>
    %22 = vector.broadcast %21 : vector<1x256xf32> to vector<8x256xf32>
    %23 = arith.addf %20, %22 : vector<8x256xf32>
    %cst_10 = arith.constant 0.000000e+00 : f32
    %24 = vector.broadcast %cst_10 : f32 to vector<8x256xf32>
    %25 = arith.maximumf %23, %24 : vector<8x256xf32>
    %26 = arith.truncf %25 : vector<8x256xf32> to vector<8x256xbf16>
    %c0_11 = arith.constant 0 : index
    %c0_12 = arith.constant 0 : index
    %27 = vector.load %arg6[%c0_11, %c0_12] : memref<256x128xbf16, #tpu.memory_space<vmem>>, vector<256x128xbf16>
    %cst_13 = arith.constant dense<0.000000e+00> : vector<8x128xf32>
    %28 = tpu.matmul %26, %27, %cst_13 {dimension_numbers = #tpu.dot_dimension_numbers<[1], [0], [0], [1], [0, 0, 1, 1], [], []>} : vector<8x256xbf16>, vector<256x128xbf16>, vector<8x128xf32> -> vector<8x128xf32>
    %c0_14 = arith.constant 0 : index
    %c0_15 = arith.constant 0 : index
    %29 = vector.load %arg7[%c0_14, %c0_15] : memref<1x128xf32, #tpu.memory_space<vmem>>, vector<1x128xf32>
    %30 = vector.broadcast %29 : vector<1x128xf32> to vector<8x128xf32>
    %31 = arith.addf %28, %30 : vector<8x128xf32>
    %32 = vector.extract_strided_slice %31 {offsets = [0, 0], sizes = [8, 3], strides = [1, 1]} : vector<8x128xf32> to vector<8x3xf32>
    %c0_16 = arith.constant 0 : index
    %c0_17 = arith.constant 0 : index
    %33 = vector.load %arg8[%c0_16, %c0_17] : memref<8x3xf32, #tpu.memory_space<vmem>>, vector<8x3xf32>
    tpu.vector_store %arg8[%c0_16, %c0_17], %32 {strides = array<i32>} : memref<8x3xf32, #tpu.memory_space<vmem>>, vector<8x3xf32>,
    return
  }
  func.func @transform_0(%arg0: i32) -> (i32, i32) {
    %c0_i32 = arith.constant 0 : i32
    %c0_i32_0 = arith.constant 0 : i32
    return %arg0, %c0_i32 : i32, i32
  }
  func.func @transform_1(%arg0: i32) -> (i32, i32) {
    %c0_i32 = arith.constant 0 : i32
    %c0_i32_0 = arith.constant 0 : i32
    %c0_i32_1 = arith.constant 0 : i32
    return %c0_i32, %c0_i32_0 : i32, i32
  }
  func.func @transform_2(%arg0: i32) -> (i32, i32) {
    %c0_i32 = arith.constant 0 : i32
    %c0_i32_0 = arith.constant 0 : i32
    %c0_i32_1 = arith.constant 0 : i32
    return %c0_i32, %c0_i32_0 : i32, i32
  }
  func.func @transform_3(%arg0: i32) -> (i32, i32) {
    %c0_i32 = arith.constant 0 : i32
    %c0_i32_0 = arith.constant 0 : i32
    %c0_i32_1 = arith.constant 0 : i32
    return %c0_i32, %c0_i32_0 : i32, i32
  }
  func.func @transform_4(%arg0: i32) -> (i32, i32) {
    %c0_i32 = arith.constant 0 : i32
    %c0_i32_0 = arith.constant 0 : i32
    %c0_i32_1 = arith.constant 0 : i32
    return %c0_i32, %c0_i32_0 : i32, i32
  }
  func.func @transform_5(%arg0: i32) -> (i32, i32) {
    %c0_i32 = arith.constant 0 : i32
    %c0_i32_0 = arith.constant 0 : i32
    %c0_i32_1 = arith.constant 0 : i32
    return %c0_i32, %c0_i32_0 : i32, i32
  }
  func.func @transform_6(%arg0: i32) -> (i32, i32) {
    %c0_i32 = arith.constant 0 : i32
    %c0_i32_0 = arith.constant 0 : i32
    %c0_i32_1 = arith.constant 0 : i32
    return %c0_i32, %c0_i32_0 : i32, i32
  }
  func.func @transform_7(%arg0: i32) -> (i32, i32) {
    %c0_i32 = arith.constant 0 : i32
    %c0_i32_0 = arith.constant 0 : i32
    return %arg0, %c0_i32 : i32, i32
  }
}

</mosaic_0001>

<bundles_post_ra>
// kernel: tpu_custom_call.1
= control target key start
LH: loop header
LB: loop body
LE: loop exit
PB: predicated region body
PF: predicated region fallthrough
CT: control target
= control target key end

     0   :  { %12 = vsyncpa [#allocation3], 0  ;;  %s582_s0 = inlined_call_operand.vmem [shape: f32[8,2], index: 0, kind: input, shape index: {}]   ;;  %s583_s1 = inlined_call_operand.vmem [shape: f32[2,64], index: 1, kind: input, shape index: {}]   ;;  %s584_s2 = inlined_call_operand.vmem [shape: f32[1,64], index: 2, kind: input, shape index: {}]   ;;  %s585_s3 = inlined_call_operand.hbm [shape: bf16[64,256], index: 3, kind: input, shape index: {}]   ;;  %s586_s4 = inlined_call_operand.vmem [shape: f32[1,256], index: 4, kind: input, shape index: {}]   ;;  %s587_s5 = inlined_call_operand.hbm [shape: bf16[256,128], index: 5, kind: input, shape index: {}]   ;;  %s588_s6 = inlined_call_operand.vmem [shape: f32[1,128], index: 6, kind: input, shape index: {}]   ;;  %s589_s7 = inlined_call_operand.vmem [shape: f32[8,3], index: 7, kind: output, shape index: {}]  }
   0x1   :  { %13 = vsyncpa [#allocation5], 0  ;;  %s510_s24 = smov [#allocation2]  }
   0x2   :  { %s25_s25 = sshll.u32 %s510_s24, 4  ;;  %s26_s25 = int_to_ptr.vmem [resolvable:$true] %s25_s25 }
   0x3   :  { %s474_s26 = scalar_lea.vmem %s26_s25, 1024  ;;  %p479_p1 = scmp.lt.s32.totalorder %s26_s25, %s26_s25 }
   0x4   :  { %p475_p0 = scmp.ne.s32.totalorder %s26_s25, %s474_s26  ;;  %p480_p2 = scmp.lt.s32.totalorder %s474_s26, %s474_s26 }
   0x6   :  { %p481_p3 = por %p480_p2, %p479_p1 }
   0x8   :  { %p482_p4 = pnand %p481_p3, %p475_p0 }
   0xa   :  { %485 = shalt.err (!%p482_p4)
}
   0xb   :  { %s511_s27 = smov 128   ;;  %s512_s28 = smov 8  }
   0xc   :  { %31 = dma.hbm_to_vmem [thread:$0]  %s585_s3, 1024, %s26_s25, [#allocation3], %s511_s27, %s511_s27, %s512_s28  }
   0xd   :  { %s513_s8 = smov [#allocation4]  }
   0xe   :  { %s39_s9 = sshll.u32 %s513_s8, 4  ;;  %s40_s9 = int_to_ptr.vmem [resolvable:$true] %s39_s9 }
   0xf   :  { %s494_s10 = scalar_lea.vmem %s40_s9, 2048  ;;  %p499_p6 = scmp.lt.s32.totalorder %s40_s9, %s40_s9 }
  0x10   :  { %p495_p5 = scmp.ne.s32.totalorder %s40_s9, %s494_s10  ;;  %p500_p7 = scmp.lt.s32.totalorder %s494_s10, %s494_s10 }
  0x12   :  { %p501_p8 = por %p500_p7, %p499_p6 }
  0x14   :  { %p502_p9 = pnand %p501_p8, %p495_p5 }
  0x16   :  { %505 = shalt.err (!%p502_p9)
}
  0x17   :  { %s514_s11 = smov 64   ;;  %s515_s12 = smov 4  }
  0x18   :  { %45 = dma.hbm_to_vmem [thread:$0]  %s587_s5, 2048, %s40_s9, [#allocation5], %s514_s11, %s514_s11, %s515_s12  }
  0x19   :  { %506 = dma.done.wait [#allocation3], 1024  }
  0x1a   :  { %507 = vsyncadd [#allocation3], 4294966272 }
  0x1b   :  { %508 = dma.done.wait [#allocation5], 2048  }
  0x1c   :  { %509 = vsyncadd [#allocation5], 4294965248  ;;  %v516_v0 = vmov 0   ;;  %v55_v1 = vld [vmem:[%s582_s0] sm:$0xff]  ;;  %v438_v2 = vld [vmem:[#allocation2 + $0x34] ss:$8 sps:$4 sm:$0xff]   ;;  %v63_v23 = vlaneseq }
  0x1d   :  { %436 = vset.pattern.permute.xlu0 %v516_v0  ;;  %183 = vmatprep.mubr.bf16.mxu0 %v516_v0  ;;  %v440_v3 = vld [vmem:[#allocation2 + $0x30] ss:$8 sps:$4 sm:$0xff]   ;;  %v441_v4 = vld [vmem:[#allocation2 + $0x24] ss:$8 sps:$4 sm:$0xff]   ;;  %v443_v5 = vld [vmem:[#allocation2 + $0x20] ss:$8 sps:$4 sm:$0xff]  }
  0x1e   :  { %60 = vperm.xlu0 %436, %v55_v1   ;;  %159 = vmatprep.subr.bf16.mxu0 %v438_v2  ;;  %v517_v6 = vmov 1   ;;  %v444_v7 = vld [vmem:[#allocation2 + $0x14] ss:$8 sps:$4 sm:$0xff]   ;;  %v446_v8 = vld [vmem:[#allocation2 + $0x10] ss:$8 sps:$4 sm:$0xff]   ;;  %v454_v15 = vld [vmem:[#allocation4 + $0x68] sm:$0xff]  }
  0x1f   :  { %160 = vmatpush1.bf16.msra.mxu0 %v440_v3  ;;  %v447_v9 = vld [vmem:[#allocation2 + $0x4] ss:$8 sps:$4 sm:$0xff]   ;;  %v450_v10 = vld [vmem:[#allocation4 + $0x78] sm:$0xff]   ;;  %v452_v12 = vld [vmem:[#allocation4 + $0x70] sm:$0xff]   ;;  %v64_v24 = vshrl.u32 %v63_v23, 7  ;;  %vm147_vm0 = vcmask 523264  }
  0x20   :  { %161 = vmatprep.subr.bf16.mxu0 %v441_v4  ;;  %v451_v11 = vld [vmem:[#allocation4 + $0x38] sm:$0xff]   ;;  %v449_v13 = vld [vmem:[#allocation2] ss:$8 sps:$4 sm:$0xff]   ;;  %406 = vmatprep.subr.bf16.mxu1 %v450_v10  ;;  %v453_v14 = vld [vmem:[#allocation4 + $0x30] sm:$0xff]   ;;  %vm371_vm1 = vcmask 23552  }
  0x21   :  { %407 = vmatpush3.bf16.msra.mxu1 %v451_v11  ;;  %v455_v16 = vld [vmem:[#allocation4 + $0x28] sm:$0xff]   ;;  %v456_v17 = vld [vmem:[#allocation4 + $0x60] sm:$0xff]   ;;  %v458_v19 = vld [vmem:[#allocation4 + $0x58] sm:$0xff]   ;;  %v65_v25 = vsub.s32 0, %v64_v24  ;;  %v81_v28 = vsub.s32 1, %v64_v24 }
  0x22   :  { %437 = vset.pattern.permute.xlu0 %v517_v6  ;;  %408 = vmatprep.subr.bf16.mxu1 %v452_v12  ;;  %v457_v18 = vld [vmem:[#allocation4 + $0x20] sm:$0xff]   ;;  %v459_v20 = vld [vmem:[#allocation4 + $0x18] sm:$0xff]   ;;  %v460_v21 = vld [vmem:[#allocation4 + $0x50] sm:$0xff]  }
  0x23   :  { %76 = vperm.xlu0 %437, %v55_v1   ;;  %162 = vmatpush1.bf16.msra.mxu0 %v443_v5  ;;  %v461_v22 = vld [vmem:[#allocation4 + $0x10] sm:$0xff]   ;;  %v56_v26 = vld [vmem:[%s583_s1] sm:$0x3]  ;;  %v462_v39 = vld [vmem:[#allocation4 + $0x48] sm:$0xff]  }
  0x24   :  { %163 = vmatprep.subr.bf16.mxu0 %v444_v7  ;;  %v66_v27 = vrot.slane %v56_v26, %v65_v25  ;;  %v82_v31 = vrot.slane %v56_v26, %v81_v28  ;;  %v379_v32 = vld [vmem:[%s584_s2] ss:$0 sm:$0xff]  ;;  %v463_v40 = vld [vmem:[#allocation4 + $0x8] sm:$0xff]  }
  0x25   :  { %409 = vmatpush3.bf16.msra.mxu1 %v453_v14  ;;  %v464_v41 = vld [vmem:[#allocation4 + $0x40] sm:$0xff]  }
  0x26   :  { %410 = vmatprep.subr.bf16.mxu1 %v454_v15  ;;  %v465_v42 = vld [vmem:[#allocation4] sm:$0xff]  }
  0x27   :  { %164 = vmatpush1.bf16.msra.mxu0 %v446_v8  ;;  %v95_v43 = vld [vmem:[%s586_s4] sm:$0x3] }
  0x28   :  { %165 = vmatprep.subr.bf16.mxu0 %v447_v9  ;;  %v100_v44 = vrot.slane %v95_v43, %v65_v25  ;;  %v104_v45 = vrot.slane %v95_v43, %v81_v28  ;;  %v389_v57 = vld [vmem:[%s588_s6] ss:$0 sm:$0xff] }
  0x29   :  { %411 = vmatpush3.bf16.msra.mxu1 %v455_v16 }
  0x2a   :  { %412 = vmatprep.subr.bf16.mxu1 %v456_v17 }
  0x2b   :  { %166 = vmatpush1.bf16.msra.mxu0 %v449_v13 }
  0x2d   :  { %413 = vmatpush3.bf16.msra.mxu1 %v457_v18 }
  0x2e   :  { %414 = vmatprep.subr.bf16.mxu1 %v458_v19 }
  0x31   :  { %415 = vmatpush3.bf16.msra.mxu1 %v459_v20 }
  0x32   :  { %416 = vmatprep.subr.bf16.mxu1 %v460_v21 }
  0x35   :  { %417 = vmatpush3.bf16.msra.mxu1 %v461_v22 }
  0x36   :  { %418 = vmatprep.subr.bf16.mxu1 %v462_v39 }
  0x39   :  { %419 = vmatpush3.bf16.msra.mxu1 %v463_v40 }
  0x3a   :  { %420 = vmatprep.subr.bf16.mxu1 %v464_v41 }
  0x3d   :  { %421 = vmatpush3.bf16.msra.mxu1 %v465_v42 }
  0x99   :  { %v61_v29 = vpop.permute.xlu0 %60 }
  0x9a   :  { %v67_v30 = vmul.f32 %v66_v27, %v61_v29 }
  0x9c   :  { %v74_v34 = vadd.f32 %v379_v32, %v67_v30 }
  0x9e   :  { %v77_v33 = vpop.permute.xlu0 %76 }
  0x9f   :  { %v83_v35 = vmul.f32 %v82_v31, %v77_v33 }
  0xa1   :  { %v84_v36 = vadd.f32 %v83_v35, %v74_v34 }
  0xa3   :  { %v85_v37 = vmax.f32 %v84_v36, 0.0 }
  0xa5   :  { %v86_v38 = vpack.c.bf16 %v85_v37, %v85_v37 }
  0xa7   :  { %388 = vmatmul.mubr.msk.bf16.vlgmr.msra.gmra.mxu0 %vm147_vm0, %v86_v38 }
 0x167   :  { %v185_v46 = vpop.f32.mrf.mxu0 }
 0x168   :  { %v186_v47 = vadd.f32 %v185_v46, %v100_v44 }
 0x169   :  { %v187_v48 = vpop.f32.mrf.mxu0 }
 0x16a   :  { %v188_v49 = vadd.f32 %v187_v48, %v104_v45  ;;  %v192_v50 = vmax.f32 %v186_v47, 0.0 }
 0x16b   :  { %v189_v51 = vpop.f32.mrf.mxu0 }
 0x16c   :  { %v193_v52 = vmax.f32 %v188_v49, 0.0  ;;  %v194_v55 = vpack.c.bf16 %v192_v50, %v192_v50 }
 0x16d   :  { %v190_v53 = vpop.f32.mrf.mxu0 }
 0x16e   :  { %v195_v54 = vpack.c.bf16 %v193_v52, %v193_v52 }
 0x170   :  { %363 = vmatprep.mubr.bf16.mxu1 %v195_v54 }
 0x171   :  { %364 = vmatmul.mubr.bf16.vlgmr.msra.gmra.mxu1 %v194_v55 }
 0x231   :  { %v422_v56 = vpop.f32.mrf.mxu1 }
 0x233   :  { %v423_v58 = vpop.f32.mrf.mxu1 }
 0x234   :  { %v424_v59 = vadd.f32 %v423_v58, %v422_v56 }
 0x235   :  { %v425_v60 = vpop.f32.mrf.mxu1 }
 0x236   :  { %v366_v61 = vadd.f32 %v424_v59, %v389_v57 }
 0x237   :  { %v426_v62 = vpop.f32.mrf.mxu1 }
 0x238   :  { %372 = vst.msk [vmem:[%s589_s7] sm:$0xff] %vm371_vm1, %v366_v61 }
 0x239   :  { %377 = vsyncpa [#allocation3], 1 }
 0x23a   :  { %378 = vsyncpa [#allocation5], 1 }

</bundles_post_ra>
